<compile_context>
chip_gen: v7x
topology: tpu7x:2x2x1
jax: 0.10.0
libtpu: 0.0.40
codegen_flags: <defaults>
</compile_context>

<pallas_src>
import functools

import numpy as np
import jax
import jax.numpy as jnp
from jax.experimental import pallas as pl
from jax.experimental.pallas import tpu as pltpu


def _c1_loss_kernel(src_ref, tgt_ref, ws_ref, wt_ref, anchor_ref,
                    seg_all_ref, seg_rest_ref, pick_ref, out_ref, *, B):
    f32 = jnp.float32
    src = src_ref[...]                                   # (BC, D) f32
    tgt = tgt_ref[...]                                   # (BC, D) f32

    # resnet=True residual maps: x + x @ W^T (weights pre-transposed host-side).
    src_mid = src + jnp.dot(src, ws_ref[...], preferred_element_type=f32)
    tgt_mid = tgt + jnp.dot(tgt, wt_ref[...], preferred_element_type=f32)

    # norm_input=True: x / (||x||_2 + 1e-9), exact eps semantics of the reference.
    eps = f32(1e-9)
    src_nrm = jnp.sqrt(jnp.sum(src_mid * src_mid, axis=-1, keepdims=True))  # (BC, 1)
    tgt_nrm = jnp.sqrt(jnp.sum(tgt_mid * tgt_mid, axis=-1, keepdims=True))  # (BC, 1)
    src_mid = src_mid * pl.reciprocal(src_nrm + eps)
    tgt_mid = tgt_mid * pl.reciprocal(tgt_nrm + eps)

    # Swapped anchors: row b*C+c picks row b*C, via a constant one-hot selection matmul.
    A = anchor_ref[...]                                  # (BC, BC) constant
    tgt_anchor = jnp.dot(A, tgt_mid, preferred_element_type=f32)   # (BC, D)
    src_anchor = jnp.dot(A, src_mid, preferred_element_type=f32)   # (BC, D)

    # sum_1[b,c] = <src_mid[b,c], tgt_mid[b,0]>;  sum_2[b,c] = <tgt_mid[b,c], src_mid[b,0]>
    s1 = jnp.sum(src_mid * tgt_anchor, axis=-1, keepdims=True)     # (BC, 1)
    s2 = jnp.sum(tgt_mid * src_anchor, axis=-1, keepdims=True)     # (BC, 1)
    e1 = jnp.exp(s1)
    e2 = jnp.exp(s2)

    # denom[b] = sum_c exp(sum_2[b,c]) + sum_{c>=1} exp(sum_1[b,c])  (segment-sum matmuls)
    denoms = (jnp.dot(seg_all_ref[...], e2, preferred_element_type=f32)
              + jnp.dot(seg_rest_ref[...], e1, preferred_element_type=f32))  # (B, 1)
    s2_anchor = jnp.dot(pick_ref[...], s2, preferred_element_type=f32)       # (B, 1)

    # loss = -mean_b( sum_2[b,0] - log(denom[b]) )
    out_ref[0, 0] = -jnp.sum(s2_anchor - jnp.log(denoms)) * f32(1.0 / B)


@jax.jit
def c1_model_loss(src, tgt, w_s, w_t):
    """C1_Model.forward (train mode, dropout p=0) -> scalar loss_repel.

    src, tgt: (B, C, D); w_s, w_t: (D, D) nn.Linear weights laid out (out, in).
    """
    B, C, D = src.shape
    BC = B * C

    # Trace-time (free under jit) layout prep: flatten activations, pre-transpose weights.
    src2d = src.reshape(BC, D).astype(jnp.float32)
    tgt2d = tgt.reshape(BC, D).astype(jnp.float32)
    ws_t = w_s.T.astype(jnp.float32)
    wt_t = w_t.T.astype(jnp.float32)

    # Trace-time constant one-hot matrices (baked into the jitted executable).
    anchor_sel = np.zeros((BC, BC), np.float32)   # row b*C+c selects row b*C
    seg_all = np.zeros((B, BC), np.float32)       # all conf entries of batch b
    seg_rest = np.zeros((B, BC), np.float32)      # conf entries c >= 1 of batch b
    pick = np.zeros((B, BC), np.float32)          # anchor entry (c == 0) of batch b
    for b in range(B):
        anchor_sel[b * C:(b + 1) * C, b * C] = 1.0
        seg_all[b, b * C:(b + 1) * C] = 1.0
        seg_rest[b, b * C + 1:(b + 1) * C] = 1.0
        pick[b, b * C] = 1.0

    kernel = functools.partial(_c1_loss_kernel, B=B)
    vmem = pl.BlockSpec(memory_space=pltpu.MemorySpace.VMEM)
    out = pl.pallas_call(
        kernel,
        out_shape=jax.ShapeDtypeStruct((1, 1), jnp.float32),
        in_specs=[vmem] * 8,
        out_specs=pl.BlockSpec(memory_space=pltpu.MemorySpace.SMEM),
    )(src2d, tgt2d, ws_t, wt_t,
      jnp.asarray(anchor_sel), jnp.asarray(seg_all),
      jnp.asarray(seg_rest), jnp.asarray(pick))
    # NOTE: at realistic (large) B*C, add a grid axis over BC with
    # dimension_semantics=("parallel",) + per-core partial sums to use both v7x
    # TensorCores, and re-derive the activation tile against v7x's 64 MiB VMEM.
    # At B=2, C=4 a single grid point is latency-optimal.
    return out[0, 0]


@jax.jit
def c1_model_loss_ref(src, tgt, w_s, w_t):
    """Pure-JAX reference mirroring the PyTorch forward_sup (train mode)."""
    src = src.astype(jnp.float32)
    tgt = tgt.astype(jnp.float32)
    src_mid = src + jnp.einsum('bcd,ed->bce', src, w_s)
    tgt_mid = tgt + jnp.einsum('bcd,ed->bce', tgt, w_t)
    tgt_mid = tgt_mid / (jnp.linalg.norm(tgt_mid, axis=-1, keepdims=True) + 1e-9)
    src_mid = src_mid / (jnp.linalg.norm(src_mid, axis=-1, keepdims=True) + 1e-9)
    src_anchor = src_mid[:, 0:1, :]
    tgt_anchor = tgt_mid[:, 0:1, :]
    s1 = jnp.sum(src_mid * tgt_anchor, axis=-1)
    s2 = jnp.sum(tgt_mid * src_anchor, axis=-1)
    s3 = jnp.exp(jnp.concatenate([s2, s1[:, 1:]], axis=-1))
    return -jnp.mean(jnp.log(s3[:, 0] / jnp.sum(s3, axis=1)))


if __name__ == "__main__":
    # Small shapes consistent with the module: batch=2, conf=4, D_emb=32.
    B, C, D = 2, 4, 32
    key = jax.random.PRNGKey(0)
    k_src, k_tgt, k_ws, k_wt = jax.random.split(key, 4)

    src = jax.random.normal(k_src, (B, C, D), dtype=jnp.float32)
    tgt = jax.random.normal(k_tgt, (B, C, D), dtype=jnp.float32)

    # Deterministic Linear(D, D, bias=False) weights, uniform(-1/sqrt(D), 1/sqrt(D)).
    bound = 1.0 / (D ** 0.5)
    w_s = jax.random.uniform(k_ws, (D, D), jnp.float32, -bound, bound)
    w_t = jax.random.uniform(k_wt, (D, D), jnp.float32, -bound, bound)

    loss = jax.block_until_ready(c1_model_loss(src, tgt, w_s, w_t))
    loss_ref = jax.block_until_ready(c1_model_loss_ref(src, tgt, w_s, w_t))

    assert jnp.allclose(loss, loss_ref, rtol=1e-5, atol=1e-5), (loss, loss_ref)
    print("KERNEL_OK")
</pallas_src>

<mosaic_0001>
module attributes {stable_mosaic.version = 11 : i64} {
  func.func @_c1_loss_kernel(%arg0: memref<8x32xf32, #tpu.memory_space<vmem>>, %arg1: memref<8x32xf32, #tpu.memory_space<vmem>>, %arg2: memref<32x32xf32, #tpu.memory_space<vmem>>, %arg3: memref<32x32xf32, #tpu.memory_space<vmem>>, %arg4: memref<8x8xf32, #tpu.memory_space<vmem>>, %arg5: memref<2x8xf32, #tpu.memory_space<vmem>>, %arg6: memref<2x8xf32, #tpu.memory_space<vmem>>, %arg7: memref<2x8xf32, #tpu.memory_space<vmem>>, %arg8: memref<1x1xf32, #tpu.memory_space<smem>>) attributes {dimension_semantics = [], scalar_prefetch = 0 : i64, scratch_operands = 0 : i64, tpu.core_type = #tpu.core_type<tc>} {
    %c0 = arith.constant 0 : index
    %c0_0 = arith.constant 0 : index
    %0 = vector.load %arg0[%c0, %c0_0] : memref<8x32xf32, #tpu.memory_space<vmem>>, vector<8x32xf32>
    %c0_1 = arith.constant 0 : index
    %c0_2 = arith.constant 0 : index
    %1 = vector.load %arg1[%c0_1, %c0_2] : memref<8x32xf32, #tpu.memory_space<vmem>>, vector<8x32xf32>
    %c0_3 = arith.constant 0 : index
    %c0_4 = arith.constant 0 : index
    %2 = vector.load %arg2[%c0_3, %c0_4] : memref<32x32xf32, #tpu.memory_space<vmem>>, vector<32x32xf32>
    %cst = arith.constant dense<0.000000e+00> : vector<8x32xf32>
    %3 = tpu.matmul %0, %2, %cst {dimension_numbers = #tpu.dot_dimension_numbers<[1], [0], [0], [1], [0, 0, 1, 1], [], []>} : vector<8x32xf32>, vector<32x32xf32>, vector<8x32xf32> -> vector<8x32xf32>
    %4 = arith.addf %0, %3 : vector<8x32xf32>
    %c0_5 = arith.constant 0 : index
    %c0_6 = arith.constant 0 : index
    %5 = vector.load %arg3[%c0_5, %c0_6] : memref<32x32xf32, #tpu.memory_space<vmem>>, vector<32x32xf32>
    %cst_7 = arith.constant dense<0.000000e+00> : vector<8x32xf32>
    %6 = tpu.matmul %1, %5, %cst_7 {dimension_numbers = #tpu.dot_dimension_numbers<[1], [0], [0], [1], [0, 0, 1, 1], [], []>} : vector<8x32xf32>, vector<32x32xf32>, vector<8x32xf32> -> vector<8x32xf32>
    %7 = arith.addf %1, %6 : vector<8x32xf32>
    %8 = arith.mulf %4, %4 : vector<8x32xf32>
    %cst_8 = arith.constant dense<0.000000e+00> : vector<8xf32>
    %9 = vector.multi_reduction <add>, %8, %cst_8 [1] : vector<8x32xf32> to vector<8xf32>
    %10 = vector.shape_cast %9 : vector<8xf32> to vector<8x1xf32>
    %11 = math.sqrt %10 : vector<8x1xf32>
    %12 = arith.mulf %7, %7 : vector<8x32xf32>
    %cst_9 = arith.constant dense<0.000000e+00> : vector<8xf32>
    %13 = vector.multi_reduction <add>, %12, %cst_9 [1] : vector<8x32xf32> to vector<8xf32>
    %14 = vector.shape_cast %13 : vector<8xf32> to vector<8x1xf32>
    %15 = math.sqrt %14 : vector<8x1xf32>
    %cst_10 = arith.constant 9.99999971E-10 : f32
    %16 = vector.broadcast %cst_10 : f32 to vector<8x1xf32>
    %17 = arith.addf %11, %16 : vector<8x1xf32>
    %18 = tpu.reciprocal %17 : vector<8x1xf32> -> vector<8x1xf32>
    %19 = vector.broadcast %18 : vector<8x1xf32> to vector<8x32xf32>
    %20 = arith.mulf %4, %19 : vector<8x32xf32>
    %cst_11 = arith.constant 9.99999971E-10 : f32
    %21 = vector.broadcast %cst_11 : f32 to vector<8x1xf32>
    %22 = arith.addf %15, %21 : vector<8x1xf32>
    %23 = tpu.reciprocal %22 : vector<8x1xf32> -> vector<8x1xf32>
    %24 = vector.broadcast %23 : vector<8x1xf32> to vector<8x32xf32>
    %25 = arith.mulf %7, %24 : vector<8x32xf32>
    %c0_12 = arith.constant 0 : index
    %c0_13 = arith.constant 0 : index
    %26 = vector.load %arg4[%c0_12, %c0_13] : memref<8x8xf32, #tpu.memory_space<vmem>>, vector<8x8xf32>
    %cst_14 = arith.constant dense<0.000000e+00> : vector<8x32xf32>
    %27 = tpu.matmul %26, %25, %cst_14 {dimension_numbers = #tpu.dot_dimension_numbers<[1], [0], [0], [1], [0, 0, 1, 1], [], []>} : vector<8x8xf32>, vector<8x32xf32>, vector<8x32xf32> -> vector<8x32xf32>
    %cst_15 = arith.constant dense<0.000000e+00> : vector<8x32xf32>
    %28 = tpu.matmul %26, %20, %cst_15 {dimension_numbers = #tpu.dot_dimension_numbers<[1], [0], [0], [1], [0, 0, 1, 1], [], []>} : vector<8x8xf32>, vector<8x32xf32>, vector<8x32xf32> -> vector<8x32xf32>
    %29 = arith.mulf %20, %27 : vector<8x32xf32>
    %cst_16 = arith.constant dense<0.000000e+00> : vector<8xf32>
    %30 = vector.multi_reduction <add>, %29, %cst_16 [1] : vector<8x32xf32> to vector<8xf32>
    %31 = vector.shape_cast %30 : vector<8xf32> to vector<8x1xf32>
    %32 = arith.mulf %25, %28 : vector<8x32xf32>
    %cst_17 = arith.constant dense<0.000000e+00> : vector<8xf32>
    %33 = vector.multi_reduction <add>, %32, %cst_17 [1] : vector<8x32xf32> to vector<8xf32>
    %34 = vector.shape_cast %33 : vector<8xf32> to vector<8x1xf32>
    %35 = math.exp %31 : vector<8x1xf32>
    %36 = math.exp %34 : vector<8x1xf32>
    %c0_18 = arith.constant 0 : index
    %c0_19 = arith.constant 0 : index
    %37 = vector.load %arg5[%c0_18, %c0_19] : memref<2x8xf32, #tpu.memory_space<vmem>>, vector<2x8xf32>
    %cst_20 = arith.constant dense<0.000000e+00> : vector<2x1xf32>
    %38 = tpu.matmul %37, %36, %cst_20 {dimension_numbers = #tpu.dot_dimension_numbers<[1], [0], [0], [1], [0, 0, 1, 1], [], []>} : vector<2x8xf32>, vector<8x1xf32>, vector<2x1xf32> -> vector<2x1xf32>
    %c0_21 = arith.constant 0 : index
    %c0_22 = arith.constant 0 : index
    %39 = vector.load %arg6[%c0_21, %c0_22] : memref<2x8xf32, #tpu.memory_space<vmem>>, vector<2x8xf32>
    %cst_23 = arith.constant dense<0.000000e+00> : vector<2x1xf32>
    %40 = tpu.matmul %39, %35, %cst_23 {dimension_numbers = #tpu.dot_dimension_numbers<[1], [0], [0], [1], [0, 0, 1, 1], [], []>} : vector<2x8xf32>, vector<8x1xf32>, vector<2x1xf32> -> vector<2x1xf32>
    %41 = arith.addf %38, %40 : vector<2x1xf32>
    %c0_24 = arith.constant 0 : index
    %c0_25 = arith.constant 0 : index
    %42 = vector.load %arg7[%c0_24, %c0_25] : memref<2x8xf32, #tpu.memory_space<vmem>>, vector<2x8xf32>
    %cst_26 = arith.constant dense<0.000000e+00> : vector<2x1xf32>
    %43 = tpu.matmul %42, %34, %cst_26 {dimension_numbers = #tpu.dot_dimension_numbers<[1], [0], [0], [1], [0, 0, 1, 1], [], []>} : vector<2x8xf32>, vector<8x1xf32>, vector<2x1xf32> -> vector<2x1xf32>
    %44 = math.log %41 : vector<2x1xf32>
    %45 = arith.subf %43, %44 : vector<2x1xf32>
    %46 = vector.shape_cast %45 : vector<2x1xf32> to vector<1x2x1xf32>
    %cst_27 = arith.constant dense<0.000000e+00> : vector<1xf32>
    %47 = vector.multi_reduction <add>, %46, %cst_27 [1, 2] : vector<1x2x1xf32> to vector<1xf32>
    %48 = vector.shape_cast %47 : vector<1xf32> to vector<1x1x1xf32>
    %49 = vector.extract %48[0, 0, 0] : f32 from vector<1x1x1xf32>
    %cst_28 = arith.constant 0.000000e+00 : f32
    %50 = arith.subf %cst_28, %49 : f32
    %cst_29 = arith.constant 5.000000e-01 : f32
    %51 = arith.mulf %50, %cst_29 : f32
    %c0_30 = arith.constant 0 : index
    %c0_31 = arith.constant 0 : index
    %52 = memref.load %arg8[%c0_30, %c0_31] : memref<1x1xf32, #tpu.memory_space<smem>>
    memref.store %51, %arg8[%c0_30, %c0_31] : memref<1x1xf32, #tpu.memory_space<smem>>
    return
  }
}

</mosaic_0001>

<bundles_post_ra>
// kernel: c1_model_loss.1
= control target key start
LH: loop header
LB: loop body
LE: loop exit
PB: predicated region body
PF: predicated region fallthrough
CT: control target
= control target key end

     0   :  { %v747_v3 = vmov 0.0|0.0   ;;  %vm748_vm0 = vmmov 0   ;;  %v749_v9 = vmov 0.0   ;;  %s880_s0 = inlined_call_operand.vmem [shape: f32[8,32], index: 0, kind: input, shape index: {}]   ;;  %s881_s1 = inlined_call_operand.vmem [shape: f32[8,32], index: 1, kind: input, shape index: {}]   ;;  %s882_s2 = inlined_call_operand.vmem [shape: f32[32,32], index: 2, kind: input, shape index: {}]   ;;  %s883_s3 = inlined_call_operand.vmem [shape: f32[32,32], index: 3, kind: input, shape index: {}]   ;;  %s884_s4 = inlined_call_operand.vmem [shape: f32[8,8], index: 4, kind: input, shape index: {}]   ;;  %s885_s5 = inlined_call_operand.vmem [shape: f32[2,8], index: 5, kind: input, shape index: {}]   ;;  %s886_s6 = inlined_call_operand.vmem [shape: f32[2,8], index: 6, kind: input, shape index: {}]   ;;  %s887_s7 = inlined_call_operand.vmem [shape: f32[2,8], index: 7, kind: input, shape index: {}]   ;;  %s888_s8 = inlined_call_operand.hbm [shape: f32[1,1], index: 8, kind: output, shape index: {}]  }
   0x1   :  { %v111_v0 = vld [vmem:[%s883_s3] sm:$0xff]  ;;  %v112_v1 = vld [vmem:[%s883_s3 + $0x8] sm:$0xff]  ;;  %707 = vmatprep.subr.bf16.mxu1 %v747_v3  ;;  %701 = vmatprep.subr.bf16.mxu0 %v747_v3  ;;  %v113_v6 = vld [vmem:[%s883_s3 + $0x10] sm:$0xff] }
   0x2   :  { %v32_v2 = vld [vmem:[%s882_s2] sm:$0xff]  ;;  %v708_v4 = vpack.c.bf16 %v112_v1, %v111_v0  ;;  %v33_v5 = vld [vmem:[%s882_s2 + $0x8] sm:$0xff]  ;;  %v114_v7 = vld [vmem:[%s883_s3 + $0x18] sm:$0xff]  ;;  %673 = vmatprep.mubr.msk.f32.mxu1 %vm748_vm0, %v749_v9  ;;  %662 = vmatprep.mubr.msk.f32.mxu0 %vm748_vm0, %v749_v9 }
   0x3   :  { %v702_v8 = vpack.c.bf16 %v33_v5, %v32_v2  ;;  %v34_v10 = vld [vmem:[%s882_s2 + $0x10] sm:$0xff]  ;;  %v35_v11 = vld [vmem:[%s882_s2 + $0x18] sm:$0xff]  ;;  %v711_v12 = vpack.c.bf16 %v114_v7, %v113_v6 }
   0x4   :  { %709 = vmatpush3.bf16.msra.mxu1 %v708_v4 }
   0x5   :  { %13 = vsyncpa [#allocation3], 0  ;;  %703 = vmatpush3.bf16.msra.mxu0 %v702_v8  ;;  %710 = vmatprep.subr.bf16.mxu1 %v747_v3  ;;  %v705_v13 = vpack.c.bf16 %v35_v11, %v34_v10  ;;  %v31_v14 = vld [vmem:[%s881_s1] sm:$0xff]  ;;  %vm36_vm1 = vcmask 261120   ;;  %vm218_vm6 = vcmask 64512   ;;  %vm599_vm7 = vcmask 1024  }
   0x6   :  { %704 = vmatprep.subr.bf16.mxu0 %v747_v3  ;;  %v30_v15 = vld [vmem:[%s880_s0] sm:$0xff]  ;;  %s735_s30 = scalar_lea.hbm %s888_s8, 16 }
   0x7   :  { %v217_v42 = vld [vmem:[%s884_s4] sm:$0xff]  ;;  %p736_p0 = scmp.ne.s32.totalorder %s888_s8, %s735_s30  ;;  %p739_p1 = scmp.lt.u32.totalorder %s735_s30, %s888_s8 }
   0x8   :  { %712 = vmatpush3.bf16.msra.mxu1 %v711_v12  ;;  %v522_v55 = vld [vmem:[%s887_s7] sm:$0x3] }
   0x9   :  { %706 = vmatpush3.bf16.msra.mxu0 %v705_v13  ;;  %681 = vmatprep.subr.mxu1 %v749_v9  ;;  %v375_v58 = vld [vmem:[%s886_s6] sm:$0x3]  ;;  %p741_p2 = pnand %p739_p1, %p736_p0 }
   0xa   :  { %676 = vmatprep.subr.mxu0 %v749_v9  ;;  %v374_v61 = vld [vmem:[%s885_s5] sm:$0x3] }
   0xb   :  { %674 = vmatmul.mubr.msk.f32.vlgmr.msra.gmra.mrb[0].mxu1 %vm36_vm1, %v31_v14 }
   0xc   :  { %663 = vmatmul.mubr.msk.f32.vlgmr.msra.gmra.mrb[0].mxu0 %vm36_vm1, %v30_v15  ;;  %683 = vmatprep.mubr.msk.f32.mxu1 %vm748_vm0, %v749_v9 }
   0xd   :  { %678 = vmatprep.mubr.msk.f32.mxu0 %vm748_vm0, %v749_v9 }
  0xde   :  { %v184_v16 = vpop.f32.mrb[0].mxu1 }
  0xdf   :  { %v188_v17 = vadd.f32 %v184_v16, %v31_v14  ;;  %v675_v18 = vpop.f32.mrb[1].mxu1  ;;  %v106_v19 = vpop.f32.mrb[0].mxu0 }
  0xe0   :  { %v110_v20 = vadd.f32 %v106_v19, %v30_v15  ;;  %v664_v21 = vpop.f32.mrb[1].mxu0 }
  0xe1   :  { %v200_v22 = vmul.f32 %v188_v17, %v188_v17 }
  0xe2   :  { %v189_v23 = vmul.f32 %v110_v20, %v110_v20 }
  0xe3   :  { %v201_v24 = vsel %vm36_vm1, %v200_v22, 0.0 }
  0xe4   :  { %202 = vadd.xlane.f32.xlu0 %v201_v24  ;;  %v190_v25 = vsel %vm36_vm1, %v189_v23, 0.0 }
  0xe8   :  { %191 = vadd.xlane.f32.xlu0 %v190_v25 }
 0x171   :  { %v203_v26 = vpop.xlane.xlu0 %202 }
 0x172   :  { %721 = vrsqrt.f32 %v203_v26  ;;  %vm206_vm2 = vcmp.eq.f32.partialorder %v203_v26, inf  ;;  %v209_v30 = vand.u32 2147483648, %v203_v26  ;;  %vm208_vm3 = vcmp.eq.f32.partialorder %v203_v26, 0.0 }
 0x175   :  { %v192_v27 = vpop.xlane.xlu0 %191 }
 0x176   :  { %723 = vrsqrt.f32 %v192_v27  ;;  %vm195_vm4 = vcmp.eq.f32.partialorder %v192_v27, inf  ;;  %v198_v36 = vand.u32 2147483648, %v192_v27  ;;  %vm197_vm5 = vcmp.eq.f32.partialorder %v192_v27, 0.0 }
 0x17c   :  { %v722_v28 = vpop.eup %721 }
 0x17d   :  { %v205_v29 = vmul.f32 %v722_v28, %v203_v26 }
 0x17f   :  { %v207_v31 = vsel %vm206_vm2, %v203_v26, %v205_v29 }
 0x180   :  { %v724_v32 = vpop.eup %723  ;;  %v210_v33 = vsel %vm208_vm3, %v209_v30, %v207_v31 }
 0x181   :  { %v214_v34 = vadd.f32 1e-09, %v210_v33  ;;  %v194_v35 = vmul.f32 %v724_v32, %v192_v27 }
 0x183   :  { %725 = vrcp.f32 %v214_v34  ;;  %v196_v37 = vsel %vm195_vm4, %v192_v27, %v194_v35 }
 0x184   :  { %v199_v38 = vsel %vm197_vm5, %v198_v36, %v196_v37 }
 0x185   :  { %v211_v39 = vadd.f32 1e-09, %v199_v38 }
 0x187   :  { %727 = vrcp.f32 %v211_v39 }
 0x18d   :  { %v726_v40 = vpop.eup %725 }
 0x18e   :  { %v216_v41 = vmul.f32 %v726_v40, %v188_v17 }
 0x190   :  { %677 = vmatpush3.msra.mxu0 %v216_v41 }
 0x191   :  { %v728_v43 = vpop.eup %727  ;;  %679 = vmatmul.mubr.msk.f32.vlgmr.msra.gmra.mrb[2].mxu0 %vm218_vm6, %v217_v42  ;;  %686 = vmatprep.subr.mxu0 %v749_v9 }
 0x192   :  { %v213_v44 = vmul.f32 %v728_v43, %v110_v20  ;;  %688 = vmatprep.mubr.msk.f32.mxu0 %vm748_vm0, %v749_v9 }
 0x194   :  { %682 = vmatpush3.msra.mxu1 %v213_v44 }
 0x195   :  { %684 = vmatmul.mubr.msk.f32.vlgmr.msra.gmra.mrb[2].mxu1 %vm218_vm6, %v217_v42  ;;  %696 = vmatprep.subr.mxu1 %v749_v9 }
 0x196   :  { %698 = vmatprep.mubr.msk.f32.mxu1 %vm748_vm0, %v749_v9 }
 0x264   :  { %v288_v45 = vpop.f32.mrb[2].mxu0 }
 0x265   :  { %v362_v46 = vmul.f32 %v288_v45, %v213_v44  ;;  %v680_v47 = vpop.f32.mrb[3].mxu0 }
 0x267   :  { %v363_v48 = vsel %vm36_vm1, %v362_v46, 0.0 }
 0x268   :  { %v358_v49 = vpop.f32.mrb[2].mxu1  ;;  %364 = vadd.xlane.f32.xlu1 %v363_v48 }
 0x269   :  { %v366_v50 = vmul.f32 %v358_v49, %v216_v41  ;;  %v685_v51 = vpop.f32.mrb[3].mxu1 }
 0x26b   :  { %v367_v52 = vsel %vm36_vm1, %v366_v50, 0.0 }
 0x26c   :  { %368 = vadd.xlane.f32.xlu1 %v367_v52 }
 0x2f5   :  { %v365_v53 = vpop.xlane.xlu1 %364 }
 0x2f6   :  { %v370_v54 = vmul.f32 1.442695, %v365_v53 }
 0x2f8   :  { %729 = vpow2.f32 %v370_v54 }
 0x2f9   :  { %v369_v56 = vpop.xlane.xlu1 %368 }
 0x2fa   :  { %v372_v57 = vmul.f32 1.442695, %v369_v56  ;;  %697 = vmatpush3.msra.mxu1 %v369_v56 }
 0x2fb   :  { %699 = vmatmul.mubr.msk.f32.vlgmr.msra.gmra.mrb[4].mxu1 %vm218_vm6, %v522_v55 }
 0x2fc   :  { %731 = vpow2.f32 %v372_v57 }
 0x302   :  { %v730_v59 = vpop.eup %729 }
 0x303   :  { %687 = vmatpush3.msra.mxu0 %v730_v59 }
 0x304   :  { %689 = vmatmul.mubr.msk.f32.vlgmr.msra.gmra.mrb[4].mxu0 %vm218_vm6, %v375_v58  ;;  %691 = vmatprep.subr.mxu0 %v749_v9 }
 0x305   :  { %693 = vmatprep.mubr.msk.f32.mxu0 %vm748_vm0, %v749_v9 }
 0x306   :  { %v732_v60 = vpop.eup %731 }
 0x307   :  { %692 = vmatpush3.msra.mxu0 %v732_v60 }
 0x30c   :  { %694 = vmatmul.mubr.msk.f32.vlgmr.msra.gmra.mrb[4].mxu0 %vm218_vm6, %v374_v61 }
 0x3ce   :  { %v592_v62 = vpop.f32.mrb[4].mxu1 }
 0x3cf   :  { %v700_v63 = vpop.f32.mrb[5].mxu1 }
 0x3df   :  { %v518_v0 = vpop.f32.mrb[4].mxu0 }
 0x3e0   :  { %733 = vlog2.f32 %v518_v0  ;;  %v695_v1 = vpop.f32.mrb[5].mxu0 }
 0x3ea   :  { %v734_v2 = vpop.eup %733 }
 0x3eb   :  { %v597_v3 = vmul.f32 0.6931472, %v734_v2 }
 0x3ed   :  { %v598_v4 = vsub.f32 %v592_v62, %v597_v3 }
 0x3ef   :  { %v600_v5 = vsel %vm599_vm7, %v598_v4, 0.0 }
 0x3f0   :  { %601 = vadd.xlane.f32.xlu0 %v600_v5 }
 0x47d   :  { %v602_v6 = vpop.xlane.xlu0 %601 }
 0x47e   :  { %v603_v7 = vrot.slane %v602_v6, 4 }
 0x480   :  { %v604_v8 = vadd.f32 %v603_v7, %v602_v6 }
 0x482   :  { %v605_v9 = vrot.slane %v604_v8, 2 }
 0x484   :  { %v606_v10 = vadd.f32 %v605_v9, %v604_v8 }
 0x486   :  { %v607_v11 = vrot.slane %v606_v10, 1 }
 0x488   :  { %v608_v12 = vadd.f32 %v607_v11, %v606_v10 }
 0x48a   :  { %715 = vpush %v608_v12 }
 0x4bb   :  { %s716_s5 = spop %715 }
 0x4bc   :  { %s610_s6 = ssub.f32 0.0, %s716_s5 }
 0x4be   :  { %s611_s27 = smul.f32 0.5, %s610_s6 }
 0x4c0   :  { %613 = sst [smem:[#allocation2]] %s611_s27 }
 0x4c1   :  { %744 = shalt.err (!%p741_p2)
}
 0x4c2   :  { %s750_s13 = smov [#allocation2]  }
 0x4c3   :  { %621 = dma.smem_to_hbm %s750_s13, 16, %s888_s8, [#allocation3]  }
 0x4c4   :  { %745 = dma.done.wait [#allocation3], 16  }
 0x4c5   :  { %746 = vsyncadd [#allocation3], 4294967280 }
 0x4c6   :  { %625 = sfence }
 0x4c7   :  { %626 = vsyncpa [#allocation3], 1 }

</bundles_post_ra>
